<compile_context>
chip_gen: v5e
topology: v5e:2x2
jax: 0.10.0
libtpu: 0.0.40
codegen_flags: <defaults>
</compile_context>

<pallas_src>
import jax
import jax.numpy as jnp
from jax.experimental import pallas as pl
from jax.experimental.pallas import tpu as pltpu

H1 = 400
H2 = 300


def _round_up(x, m):
    return ((x + m - 1) // m) * m


def critic_kernel(s_ref, a_ref, w1s_ref, w1a_ref, b1_ref, w2_ref, b2_ref,
                  w3_ref, b3_ref, out_ref):
    # Layer 1: fused concat as two dots; bf16 MXU operands, f32 accumulation.
    s16 = s_ref[...].astype(jnp.bfloat16)
    a16 = a_ref[...].astype(jnp.bfloat16)
    h1 = jnp.dot(s16, w1s_ref[...], preferred_element_type=jnp.float32)
    h1 = h1 + jnp.dot(a16, w1a_ref[...], preferred_element_type=jnp.float32)
    h1 = jnp.maximum(h1 + b1_ref[...], 0.0)            # bias + ReLU in f32 (VPU)

    # Layer 2.
    h2 = jnp.dot(h1.astype(jnp.bfloat16), w2_ref[...],
                 preferred_element_type=jnp.float32)
    h2 = jnp.maximum(h2 + b2_ref[...], 0.0)

    # Layer 3 (out_features == 1): VPU multiply + lane reduce instead of an
    # MXU pass that would use a single result column.
    q = jnp.sum(h2 * w3_ref[...], axis=-1, keepdims=True)
    out_ref[...] = q + b3_ref[0]                        # scalar bias from SMEM


def critic_forward(state, action, params, *, tile_b=256):
    """state: (B, state_dim) f32, action: (B, action_dim) f32 -> (B, 1) f32."""
    w1s, w1a, b1, w2, b2, w3, b3 = params
    batch, state_dim = state.shape
    action_dim = action.shape[1]

    # Batch tile: up to 256 rows (fills v6e/v7x 256-wide MXU, multiple of 128
    # for v5e), min 8 rows for sublane alignment.  Pad batch to a tile multiple.
    tile = min(tile_b, _round_up(batch, 8))
    padded = _round_up(batch, tile)
    if padded != batch:
        pad = padded - batch
        state = jnp.pad(state, ((0, pad), (0, 0)))
        action = jnp.pad(action, ((0, pad), (0, 0)))

    const = lambda b: (0, 0)   # grid-invariant operands: single DMA

    out = pl.pallas_call(
        critic_kernel,
        out_shape=jax.ShapeDtypeStruct((padded, 1), jnp.float32),
        grid=(padded // tile,),
        in_specs=[
            pl.BlockSpec((tile, state_dim), lambda b: (b, 0)),
            pl.BlockSpec((tile, action_dim), lambda b: (b, 0)),
            pl.BlockSpec((state_dim, H1), const),
            pl.BlockSpec((action_dim, H1), const),
            pl.BlockSpec((1, H1), const),
            pl.BlockSpec((H1, H2), const),
            pl.BlockSpec((1, H2), const),
            pl.BlockSpec((1, H2), const),
            pl.BlockSpec(memory_space=pltpu.MemorySpace.SMEM),   # b3 scalar
        ],
        out_specs=pl.BlockSpec((tile, 1), lambda b: (b, 0)),
        compiler_params=pltpu.CompilerParams(
            dimension_semantics=("parallel",)),
    )(state, action, w1s, w1a, b1, w2, b2, w3, b3)
    return out[:batch]


def init_params(key, state_dim, action_dim):
    """Synthetic params matching nn.Linear fan-in init.

    Weights are stored pre-transposed (in, out).  Layer-1/2 weights are cast
    to bf16 (MXU operands); biases and the final (1, 300) weight row stay f32
    (VPU path).  layer_1's weight is split along its input dim so the
    state/action concat can be fused into two dots inside the kernel.
    """
    k = jax.random.split(key, 6)
    in1 = state_dim + action_dim
    s1 = 1.0 / jnp.sqrt(in1)
    s2 = 1.0 / jnp.sqrt(400.0)
    s3 = 1.0 / jnp.sqrt(300.0)
    w1 = jax.random.uniform(k[0], (in1, H1), jnp.float32, -s1, s1)
    b1 = jax.random.uniform(k[1], (1, H1), jnp.float32, -s1, s1)
    w2 = jax.random.uniform(k[2], (H1, H2), jnp.float32, -s2, s2)
    b2 = jax.random.uniform(k[3], (1, H2), jnp.float32, -s2, s2)
    w3 = jax.random.uniform(k[4], (1, H2), jnp.float32, -s3, s3)  # row vector
    b3 = jax.random.uniform(k[5], (1,), jnp.float32, -s3, s3)
    w1s = w1[:state_dim].astype(jnp.bfloat16)
    w1a = w1[state_dim:].astype(jnp.bfloat16)
    return (w1s, w1a, b1, w2.astype(jnp.bfloat16), b2, w3, b3)


def critic_reference(state, action, params):
    """Pure-JAX reference with identical bf16-operand / f32-accumulate math."""
    w1s, w1a, b1, w2, b2, w3, b3 = params
    s16 = state.astype(jnp.bfloat16)
    a16 = action.astype(jnp.bfloat16)
    h1 = (jnp.dot(s16, w1s, preferred_element_type=jnp.float32)
          + jnp.dot(a16, w1a, preferred_element_type=jnp.float32))
    h1 = jnp.maximum(h1 + b1, 0.0)
    h2 = jnp.dot(h1.astype(jnp.bfloat16), w2,
                 preferred_element_type=jnp.float32)
    h2 = jnp.maximum(h2 + b2, 0.0)
    return jnp.sum(h2 * w3, axis=-1, keepdims=True) + b3[0]


if __name__ == "__main__":
    state_dim = 16
    action_dim = 8

    key = jax.random.PRNGKey(0)
    kp, ks, ka = jax.random.split(key, 3)
    params = init_params(kp, state_dim, action_dim)

    # Small smoke test (single 8-row tile).
    state = jax.random.normal(ks, (8, state_dim), jnp.float32)
    action = jax.random.normal(ka, (8, action_dim), jnp.float32)
    out = jax.block_until_ready(critic_forward(state, action, params))
    ref = critic_reference(state, action, params)
    assert out.shape == (8, 1), out.shape
    assert jnp.allclose(out, ref, atol=1e-3, rtol=1e-3), (out, ref)

    # Training-sized batch: exercises 256-row tiling, padding and the
    # "parallel" batch grid axis.
    ks2, ka2 = jax.random.split(jax.random.PRNGKey(1))
    state2 = jax.random.normal(ks2, (260, state_dim), jnp.float32)
    action2 = jax.random.normal(ka2, (260, action_dim), jnp.float32)
    out2 = jax.block_until_ready(critic_forward(state2, action2, params))
    ref2 = critic_reference(state2, action2, params)
    assert out2.shape == (260, 1), out2.shape
    assert jnp.allclose(out2, ref2, atol=1e-3, rtol=1e-3)

    print("KERNEL_OK")
</pallas_src>

<mosaic_0001>
module attributes {stable_mosaic.version = 11 : i64} {
  func.func @critic_kernel(%arg0: i32, %arg1: memref<8x16xf32, #tpu.memory_space<vmem>>, %arg2: memref<8x8xf32, #tpu.memory_space<vmem>>, %arg3: memref<16x400xbf16, #tpu.memory_space<vmem>>, %arg4: memref<8x400xbf16, #tpu.memory_space<vmem>>, %arg5: memref<1x400xf32, #tpu.memory_space<vmem>>, %arg6: memref<400x300xbf16, #tpu.memory_space<vmem>>, %arg7: memref<1x300xf32, #tpu.memory_space<vmem>>, %arg8: memref<1x300xf32, #tpu.memory_space<vmem>>, %arg9: memref<1xf32, #tpu.memory_space<smem>>, %arg10: memref<8x1xf32, #tpu.memory_space<vmem>>) attributes {dimension_semantics = [#tpu.dimension_semantics<parallel>], iteration_bounds = array<i64: 1>, scalar_prefetch = 0 : i64, scratch_operands = 0 : i64, tpu.core_type = #tpu.core_type<tc>, window_params = [{transform_indices = @transform_0, window_bounds = array<i64: 8, 16>}, {transform_indices = @transform_1, window_bounds = array<i64: 8, 8>}, {pipeline_mode = #tpu.pipeline_mode<synchronous>, transform_indices = @transform_2, window_bounds = array<i64: 16, 400>}, {pipeline_mode = #tpu.pipeline_mode<synchronous>, transform_indices = @transform_3, window_bounds = array<i64: 8, 400>}, {pipeline_mode = #tpu.pipeline_mode<synchronous>, transform_indices = @transform_4, window_bounds = array<i64: 1, 400>}, {pipeline_mode = #tpu.pipeline_mode<synchronous>, transform_indices = @transform_5, window_bounds = array<i64: 400, 300>}, {pipeline_mode = #tpu.pipeline_mode<synchronous>, transform_indices = @transform_6, window_bounds = array<i64: 1, 300>}, {pipeline_mode = #tpu.pipeline_mode<synchronous>, transform_indices = @transform_7, window_bounds = array<i64: 1, 300>}, {transform_indices = @transform_8, window_bounds = array<i64: 1>}, {transform_indices = @transform_9, window_bounds = array<i64: 8, 1>}]} {
    %c0 = arith.constant 0 : index
    %c0_0 = arith.constant 0 : index
    %0 = vector.load %arg1[%c0, %c0_0] : memref<8x16xf32, #tpu.memory_space<vmem>>, vector<8x16xf32>
    %1 = arith.truncf %0 : vector<8x16xf32> to vector<8x16xbf16>
    %c0_1 = arith.constant 0 : index
    %c0_2 = arith.constant 0 : index
    %2 = vector.load %arg2[%c0_1, %c0_2] : memref<8x8xf32, #tpu.memory_space<vmem>>, vector<8x8xf32>
    %3 = arith.truncf %2 : vector<8x8xf32> to vector<8x8xbf16>
    %c0_3 = arith.constant 0 : index
    %c0_4 = arith.constant 0 : index
    %4 = vector.load %arg3[%c0_3, %c0_4] : memref<16x400xbf16, #tpu.memory_space<vmem>>, vector<16x400xbf16>
    %cst = arith.constant dense<0.000000e+00> : vector<8x400xf32>
    %5 = tpu.matmul %1, %4, %cst {dimension_numbers = #tpu.dot_dimension_numbers<[1], [0], [0], [1], [0, 0, 1, 1], [], []>} : vector<8x16xbf16>, vector<16x400xbf16>, vector<8x400xf32> -> vector<8x400xf32>
    %c0_5 = arith.constant 0 : index
    %c0_6 = arith.constant 0 : index
    %6 = vector.load %arg4[%c0_5, %c0_6] : memref<8x400xbf16, #tpu.memory_space<vmem>>, vector<8x400xbf16>
    %cst_7 = arith.constant dense<0.000000e+00> : vector<8x400xf32>
    %7 = tpu.matmul %3, %6, %cst_7 {dimension_numbers = #tpu.dot_dimension_numbers<[1], [0], [0], [1], [0, 0, 1, 1], [], []>} : vector<8x8xbf16>, vector<8x400xbf16>, vector<8x400xf32> -> vector<8x400xf32>
    %8 = arith.addf %5, %7 : vector<8x400xf32>
    %c0_8 = arith.constant 0 : index
    %c0_9 = arith.constant 0 : index
    %9 = vector.load %arg5[%c0_8, %c0_9] : memref<1x400xf32, #tpu.memory_space<vmem>>, vector<1x400xf32>
    %10 = vector.broadcast %9 : vector<1x400xf32> to vector<8x400xf32>
    %11 = arith.addf %8, %10 : vector<8x400xf32>
    %cst_10 = arith.constant 0.000000e+00 : f32
    %12 = vector.broadcast %cst_10 : f32 to vector<8x400xf32>
    %13 = arith.maximumf %11, %12 : vector<8x400xf32>
    %14 = arith.truncf %13 : vector<8x400xf32> to vector<8x400xbf16>
    %c0_11 = arith.constant 0 : index
    %c0_12 = arith.constant 0 : index
    %15 = vector.load %arg6[%c0_11, %c0_12] : memref<400x300xbf16, #tpu.memory_space<vmem>>, vector<400x300xbf16>
    %cst_13 = arith.constant dense<0.000000e+00> : vector<8x300xf32>
    %16 = tpu.matmul %14, %15, %cst_13 {dimension_numbers = #tpu.dot_dimension_numbers<[1], [0], [0], [1], [0, 0, 1, 1], [], []>} : vector<8x400xbf16>, vector<400x300xbf16>, vector<8x300xf32> -> vector<8x300xf32>
    %c0_14 = arith.constant 0 : index
    %c0_15 = arith.constant 0 : index
    %17 = vector.load %arg7[%c0_14, %c0_15] : memref<1x300xf32, #tpu.memory_space<vmem>>, vector<1x300xf32>
    %18 = vector.broadcast %17 : vector<1x300xf32> to vector<8x300xf32>
    %19 = arith.addf %16, %18 : vector<8x300xf32>
    %cst_16 = arith.constant 0.000000e+00 : f32
    %20 = vector.broadcast %cst_16 : f32 to vector<8x300xf32>
    %21 = arith.maximumf %19, %20 : vector<8x300xf32>
    %c0_17 = arith.constant 0 : index
    %c0_18 = arith.constant 0 : index
    %22 = vector.load %arg8[%c0_17, %c0_18] : memref<1x300xf32, #tpu.memory_space<vmem>>, vector<1x300xf32>
    %23 = vector.broadcast %22 : vector<1x300xf32> to vector<8x300xf32>
    %24 = arith.mulf %21, %23 : vector<8x300xf32>
    %cst_19 = arith.constant dense<0.000000e+00> : vector<8xf32>
    %25 = vector.multi_reduction <add>, %24, %cst_19 [1] : vector<8x300xf32> to vector<8xf32>
    %26 = vector.shape_cast %25 : vector<8xf32> to vector<8x1xf32>
    %c0_20 = arith.constant 0 : index
    %27 = memref.load %arg9[%c0_20] : memref<1xf32, #tpu.memory_space<smem>>
    %28 = vector.broadcast %27 : f32 to vector<8x1xf32>
    %29 = arith.addf %26, %28 : vector<8x1xf32>
    %c0_21 = arith.constant 0 : index
    %c0_22 = arith.constant 0 : index
    %30 = vector.load %arg10[%c0_21, %c0_22] : memref<8x1xf32, #tpu.memory_space<vmem>>, vector<8x1xf32>
    tpu.vector_store %arg10[%c0_21, %c0_22], %29 {strides = array<i32>} : memref<8x1xf32, #tpu.memory_space<vmem>>, vector<8x1xf32>,
    return
  }
  func.func @transform_0(%arg0: i32) -> (i32, i32) {
    %c0_i32 = arith.constant 0 : i32
    %c0_i32_0 = arith.constant 0 : i32
    return %arg0, %c0_i32 : i32, i32
  }
  func.func @transform_1(%arg0: i32) -> (i32, i32) {
    %c0_i32 = arith.constant 0 : i32
    %c0_i32_0 = arith.constant 0 : i32
    return %arg0, %c0_i32 : i32, i32
  }
  func.func @transform_2(%arg0: i32) -> (i32, i32) {
    %c0_i32 = arith.constant 0 : i32
    %c0_i32_0 = arith.constant 0 : i32
    %c0_i32_1 = arith.constant 0 : i32
    return %c0_i32, %c0_i32_0 : i32, i32
  }
  func.func @transform_3(%arg0: i32) -> (i32, i32) {
    %c0_i32 = arith.constant 0 : i32
    %c0_i32_0 = arith.constant 0 : i32
    %c0_i32_1 = arith.constant 0 : i32
    return %c0_i32, %c0_i32_0 : i32, i32
  }
  func.func @transform_4(%arg0: i32) -> (i32, i32) {
    %c0_i32 = arith.constant 0 : i32
    %c0_i32_0 = arith.constant 0 : i32
    %c0_i32_1 = arith.constant 0 : i32
    return %c0_i32, %c0_i32_0 : i32, i32
  }
  func.func @transform_5(%arg0: i32) -> (i32, i32) {
    %c0_i32 = arith.constant 0 : i32
    %c0_i32_0 = arith.constant 0 : i32
    %c0_i32_1 = arith.constant 0 : i32
    return %c0_i32, %c0_i32_0 : i32, i32
  }
  func.func @transform_6(%arg0: i32) -> (i32, i32) {
    %c0_i32 = arith.constant 0 : i32
    %c0_i32_0 = arith.constant 0 : i32
    %c0_i32_1 = arith.constant 0 : i32
    return %c0_i32, %c0_i32_0 : i32, i32
  }
  func.func @transform_7(%arg0: i32) -> (i32, i32) {
    %c0_i32 = arith.constant 0 : i32
    %c0_i32_0 = arith.constant 0 : i32
    %c0_i32_1 = arith.constant 0 : i32
    return %c0_i32, %c0_i32_0 : i32, i32
  }
  func.func @transform_8(%arg0: i32) -> i32 {
    %c0_i32 = arith.constant 0 : i32
    %c0_i32_0 = arith.constant 0 : i32
    return %c0_i32 : i32
  }
  func.func @transform_9(%arg0: i32) -> (i32, i32) {
    %c0_i32 = arith.constant 0 : i32
    %c0_i32_0 = arith.constant 0 : i32
    return %arg0, %c0_i32 : i32, i32
  }
}

</mosaic_0001>

<bundles_post_ra>
// kernel: tpu_custom_call.1
= control target key start
LH: loop header
LB: loop body
LE: loop exit
PB: predicated region body
PF: predicated region fallthrough
CT: control target
= control target key end

     0   :  { %15 = vsyncpa [#allocation4], 0  ;;  %s1700_s0 = inlined_call_operand.hbm [shape: f32[8,16], index: 0, kind: input, shape index: {}]   ;;  %s1701_s1 = inlined_call_operand.hbm [shape: f32[8,8], index: 1, kind: input, shape index: {}]   ;;  %s1702_s2 = inlined_call_operand.hbm [shape: bf16[16,400], index: 2, kind: input, shape index: {}]   ;;  %s1703_s3 = inlined_call_operand.hbm [shape: bf16[8,400], index: 3, kind: input, shape index: {}]   ;;  %s1704_s4 = inlined_call_operand.vmem [shape: f32[1,400], index: 4, kind: input, shape index: {}]   ;;  %s1705_s5 = inlined_call_operand.hbm [shape: bf16[400,300], index: 5, kind: input, shape index: {}]   ;;  %s1706_s6 = inlined_call_operand.vmem [shape: f32[1,300], index: 6, kind: input, shape index: {}]   ;;  %s1707_s7 = inlined_call_operand.hbm [shape: f32[1,300], index: 7, kind: input, shape index: {}]   ;;  %s1708_s8 = inlined_call_operand.<no memory space> [shape: f32[1], index: 8, kind: input, shape index: {}]   ;;  %s1709_s9 = inlined_call_operand.vmem [shape: f32[8,1], index: 9, kind: output, shape index: {}]  }
   0x1   :  { %16 = vsyncpa [#allocation6], 0 }
   0x2   :  { %17 = vsyncpa [#allocation9], 0  ;;  %s35_s11 = sshll.u32 %s1701_s1, 4  ;;  %s36_s11 = int_to_ptr.hbm [resolvable:$true] %s35_s11 }
   0x3   :  { %18 = vsyncpa [#allocation12], 0  ;;  %s1575_s12 = smov [#allocation5]   ;;  %s59_s16 = sshll.u32 %s1703_s3, 4  ;;  %s60_s16 = int_to_ptr.hbm [resolvable:$true] %s59_s16 }
   0x4   :  { %s37_s13 = sshll.u32 %s1575_s12, 4  ;;  %s1576_s17 = smov [#allocation8]   ;;  %s38_s13 = int_to_ptr.vmem [resolvable:$true] %s37_s13 }
   0x5   :  { %40 = dma.hbm_to_vmem [thread:$0]  %s36_s11, 128, %s38_s13, [#allocation6]  }
   0x6   :  { %s61_s18 = sshll.u32 %s1576_s17, 4  ;;  %s24_s21 = sshll.u32 %s1700_s0, 4  ;;  %s62_s18 = int_to_ptr.vmem [resolvable:$true] %s61_s18  ;;  %s25_s21 = int_to_ptr.hbm [resolvable:$true] %s24_s21 }
   0x7   :  { %64 = dma.hbm_to_vmem [thread:$0]  %s60_s16, 256, %s62_s18, [#allocation9]  }
   0x8   :  { %s45_s23 = sshll.u32 %s1702_s2, 4  ;;  %s1577_s24 = smov [#allocation3]   ;;  %s46_s23 = int_to_ptr.hbm [resolvable:$true] %s45_s23 }
   0x9   :  { %s26_s25 = sshll.u32 %s1577_s24, 4  ;;  %s1578_s3 = smov [#allocation7]   ;;  %s27_s25 = int_to_ptr.vmem [resolvable:$true] %s26_s25 }
   0xa   :  { %29 = dma.hbm_to_vmem [thread:$0]  %s25_s21, 128, %s27_s25, [#allocation4]  }
   0xb   :  { %s47_s26 = sshll.u32 %s1578_s3, 4  ;;  %s1579_s27 = smov 256   ;;  %s48_s26 = int_to_ptr.vmem [resolvable:$true] %s47_s26 }
   0xc   :  { %s1580_s28 = smov 16   ;;  %s71_s30 = sshll.u32 %s1705_s5, 4  ;;  %s72_s30 = int_to_ptr.hbm [resolvable:$true] %s71_s30 }
   0xd   :  { %53 = dma.hbm_to_vmem [thread:$0]  %s46_s23, 512, %s48_s26, [#allocation6], %s1579_s27, %s1579_s27, %s1580_s28  }
   0xe   :  { %s1581_s10 = smov [#allocation10]   ;;  %s87_s13 = sshll.u32 %s1707_s7, 4  ;;  %s88_s13 = int_to_ptr.hbm [resolvable:$true] %s87_s13 }
   0xf   :  { %s73_s11 = sshll.u32 %s1581_s10, 4  ;;  %s1582_s14 = smov 192   ;;  %s74_s11 = int_to_ptr.vmem [resolvable:$true] %s73_s11 }
  0x10   :  { %s1583_s15 = smov 12   ;;  %s1584_s16 = smov [#allocation11]  }
  0x11   :  { %79 = dma.hbm_to_vmem [thread:$0]  %s72_s30, 9600, %s74_s11, [#allocation9], %s1582_s14, %s1582_s14, %s1583_s15  }
  0x12   :  { %s89_s17 = sshll.u32 %s1584_s16, 4  ;;  %s90_s17 = int_to_ptr.vmem [resolvable:$true] %s89_s17 }
  0x13   :  { %92 = dma.hbm_to_vmem [thread:$0]  %s88_s13, 48, %s90_s17, [#allocation12]  }
  0x14   :  { %1567 = dma.done.wait [#allocation4], 128  }
  0x15   :  { %1568 = vsyncadd [#allocation4], 4294967168 }
  0x16   :  { %1569 = dma.done.wait [#allocation6], 640  }
  0x17   :  { %1570 = vsyncadd [#allocation6], 4294966656 }
  0x18   :  { %1571 = dma.done.wait [#allocation9], 9856  }
  0x19   :  { %1572 = vsyncadd [#allocation9], 4294957440 }
  0x1a   :  { %1573 = dma.done.wait [#allocation12], 48  }
  0x1b   :  { %1574 = vsyncadd [#allocation12], 4294967248  ;;  %v128_v0 = vld [vmem:[#allocation8] sm:$0xff]  ;;  %v129_v1 = vld [vmem:[#allocation8 + $0x8] sm:$0xff]  ;;  %vm144_vm0 = vcmask 1043456   ;;  %vm140_vm1 = vcmask 64512  }
  0x1c   :  { %v122_v2 = vld [vmem:[#allocation5] sm:$0xff]  ;;  %v132_v3 = vunpack.c.l.b16 %v128_v0  ;;  %v133_v4 = vunpack.c.h.b16 %v128_v0  ;;  %v134_v5 = vunpack.c.l.b16 %v129_v1  ;;  %v135_v6 = vunpack.c.h.b16 %v129_v1  ;;  %v1021_v7 = vld [vmem:[#allocation7 + $0x8] sm:$0xf]  ;;  %v1335_v9 = vld [vmem:[#allocation7 + $0xc] sm:$0xf] }
  0x1d   :  { %v1337_v8 = vld [vmem:[#allocation7 + $0x14] sm:$0xf0]  ;;  %v1023_v10 = vld [vmem:[#allocation7 + $0x18] sm:$0xf0]  ;;  %v1013_v15 = vld [vmem:[#allocation7] sm:$0xf]  ;;  %v123_v17 = vpack.c.bf16 %v122_v2, %v122_v2 }
  0x1e   :  { %v136_v11 = vpack.c.b16 %v132_v3, %v132_v3  ;;  %v137_v12 = vpack.c.b16 %v133_v4, %v133_v4  ;;  %v138_v13 = vpack.c.b16 %v134_v5, %v134_v5  ;;  %v139_v14 = vpack.c.b16 %v135_v6, %v135_v6  ;;  %v1336_v16 = vld [vmem:[#allocation7 + $0xc] sm:$0xf0]  ;;  %v1334_v20 = vld [vmem:[#allocation7 + $0x4] sm:$0xf]  ;;  %v1015_v21 = vld [vmem:[#allocation7 + $0x10] sm:$0xf0] }
  0x1f   :  { %v1022_v18 = vor.u32 %v1337_v8, %v1021_v7  ;;  %v1026_v19 = vor.u32 %v1335_v9, %v1023_v10  ;;  %v1117_v22 = vld [vmem:[#allocation10 + $0xa8] sm:$0xf]  ;;  %v1360_v27 = vld [vmem:[#allocation10 + $0xb0] sm:$0xf0]  ;;  %v1014_v28 = vor.u32 %v1336_v16, %v1013_v15  ;;  %v1018_v29 = vor.u32 %v1334_v20, %v1015_v21  ;;  %v1105_v33 = vld [vmem:[#allocation10 + $0x90] sm:$0xf] }
  0x20   :  { %v146_v23 = vsel %vm144_vm0, %v136_v11, 0  ;;  %v149_v24 = vsel %vm144_vm0, %v137_v12, 0  ;;  %v152_v25 = vsel %vm144_vm0, %v138_v13, 0  ;;  %v155_v26 = vsel %vm144_vm0, %v139_v14, 0  ;;  %v1213_v30 = vld [vmem:[#allocation10 + $0x168] sm:$0xf] }
  0x21   :  { %164 = vmatpush.bf16.msra.mxu0 %v146_v23  ;;  %177 = vmatpush.bf16.msra.mxu1 %v149_v24  ;;  %v1384_v31 = vld [vmem:[#allocation10 + $0x170] sm:$0xf0]  ;;  %v1118_v32 = vor.u32 %v1360_v27, %v1117_v22  ;;  %v1357_v35 = vld [vmem:[#allocation10 + $0x98] sm:$0xf0]  ;;  %v1201_v36 = vld [vmem:[#allocation10 + $0x150] sm:$0xf] }
  0x22   :  { %190 = vmatpush.bf16.msra.mxu2 %v152_v25  ;;  %203 = vmatpush.bf16.msra.mxu3 %v155_v26  ;;  %v1214_v34 = vor.u32 %v1384_v31, %v1213_v30  ;;  %v1381_v37 = vld [vmem:[#allocation10 + $0x158] sm:$0xf0]  ;;  %v1106_v38 = vor.u32 %v1357_v35, %v1105_v33  ;;  %v1093_v39 = vld [vmem:[#allocation10 + $0x78] sm:$0xf]  ;;  %v1354_v41 = vld [vmem:[#allocation10 + $0x80] sm:$0xf0] }
  0x23   :  { %v1202_v40 = vor.u32 %v1381_v37, %v1201_v36  ;;  %v1189_v42 = vld [vmem:[#allocation10 + $0x138] sm:$0xf]  ;;  %v1378_v43 = vld [vmem:[#allocation10 + $0x140] sm:$0xf0]  ;;  %v1094_v44 = vor.u32 %v1354_v41, %v1093_v39  ;;  %v1081_v45 = vld [vmem:[#allocation10 + $0x60] sm:$0xf] }
  0x24   :  { %1007 = vmatmul.msk.bf16.vlgmr.msra.gmra.mxu0 %vm140_vm1, %v123_v17  ;;  %1008 = vmatmul.msk.bf16.vlgmr.msra.gmra.mxu1 %vm140_vm1, %v123_v17  ;;  %v1190_v46 = vor.u32 %v1378_v43, %v1189_v42  ;;  %v1351_v47 = vld [vmem:[#allocation10 + $0x68] sm:$0xf0]  ;;  %v1177_v48 = vld [vmem:[#allocation10 + $0x120] sm:$0xf]  ;;  %v1069_v52 = vld [vmem:[#allocation10 + $0x48] sm:$0xf] }
  0x25   :  { %1009 = vmatmul.msk.bf16.vlgmr.msra.gmra.mxu2 %vm140_vm1, %v123_v17  ;;  %1010 = vmatmul.msk.bf16.vlgmr.msra.gmra.mxu3 %vm140_vm1, %v123_v17  ;;  %v1375_v49 = vld [vmem:[#allocation10 + $0x128] sm:$0xf0]  ;;  %v120_v50 = vld [vmem:[#allocation3] sm:$0xff]  ;;  %v1082_v51 = vor.u32 %v1351_v47, %v1081_v45  ;;  %v1348_v55 = vld [vmem:[#allocation10 + $0x50] sm:$0xf0]  ;;  %vm229_vm2 = vcmask 130048  }
  0x26   :  { %266 = vmatpush.bf16.msrb.mxu2 %v1022_v18  ;;  %279 = vmatpush.bf16.msrb.mxu3 %v1026_v19  ;;  %v1178_v53 = vor.u32 %v1375_v49, %v1177_v48  ;;  %v121_v54 = vpack.c.bf16 %v120_v50, %v120_v50  ;;  %v1165_v56 = vld [vmem:[#allocation10 + $0x108] sm:$0xf]  ;;  %v1372_v57 = vld [vmem:[#allocation10 + $0x110] sm:$0xf0]  ;;  %v1070_v58 = vor.u32 %v1348_v55, %v1069_v52  ;;  %v1057_v60 = vld [vmem:[#allocation10 + $0x30] sm:$0xf] }
  0x27   :  { %240 = vmatpush.bf16.msrb.mxu0 %v1014_v28  ;;  %253 = vmatpush.bf16.msrb.mxu1 %v1018_v29  ;;  %v1166_v59 = vor.u32 %v1372_v57, %v1165_v56  ;;  %v1345_v61 = vld [vmem:[#allocation10 + $0x38] sm:$0xf0]  ;;  %v1045_v63 = vld [vmem:[#allocation10 + $0x18] sm:$0xf]  ;;  %v1342_v0 = vld [vmem:[#allocation10 + $0x20] sm:$0xf0] }
  0x28   :  { %v1058_v62 = vor.u32 %v1345_v61, %v1057_v60  ;;  %v1046_v1 = vor.u32 %v1342_v0, %v1045_v63  ;;  %v1033_v2 = vld [vmem:[#allocation10] sm:$0xf]  ;;  %v1339_v3 = vld [vmem:[#allocation10 + $0x8] sm:$0xf0]  ;;  %v1215_v5 = vld [vmem:[#allocation10 + $0x174] sm:$0xf0] }
  0x29   :  { %v1383_v4 = vld [vmem:[#allocation10 + $0x16c] sm:$0xf]  ;;  %v1034_v6 = vor.u32 %v1339_v3, %v1033_v2  ;;  %v1309_v8 = vld [vmem:[#allocation10 + $0x228] sm:$0xf]  ;;  %v1408_v9 = vld [vmem:[#allocation10 + $0x230] sm:$0xf0] }
  0x2a   :  { %v1218_v7 = vor.u32 %v1383_v4, %v1215_v5  ;;  %v1310_v10 = vor.u32 %v1408_v9, %v1309_v8  ;;  %v1153_v11 = vld [vmem:[#allocation10 + $0xf0] sm:$0xf]  ;;  %v1369_v12 = vld [vmem:[#allocation10 + $0xf8] sm:$0xf0]  ;;  %v1380_v13 = vld [vmem:[#allocation10 + $0x154] sm:$0xf] }
  0x2b   :  { %818 = vmatpush.bf16.msra.mxu0 %v1118_v32  ;;  %831 = vmatpush.bf16.msra.mxu1 %v1214_v34  ;;  %v1154_v14 = vor.u32 %v1369_v12, %v1153_v11  ;;  %v1203_v15 = vld [vmem:[#allocation10 + $0x15c] sm:$0xf0]  ;;  %v1411_v17 = vld [vmem:[#allocation10 + $0x248] sm:$0xf0]  ;;  %v1119_v21 = vld [vmem:[#allocation10 + $0xb4] sm:$0xf0] }
  0x2c   :  { %v1321_v16 = vld [vmem:[#allocation10 + $0x240] sm:$0xf]  ;;  %844 = vmatpush.bf16.msra.mxu2 %v1310_v10  ;;  %v1206_v18 = vor.u32 %v1380_v13, %v1203_v15  ;;  %v1359_v20 = vld [vmem:[#allocation10 + $0xac] sm:$0xf]  ;;  %v1297_v22 = vld [vmem:[#allocation10 + $0x210] sm:$0xf] }
  0x2d   :  { %v1322_v19 = vor.u32 %v1411_v17, %v1321_v16  ;;  %v1122_v23 = vor.u32 %v1359_v20, %v1119_v21  ;;  %v1405_v24 = vld [vmem:[#allocation10 + $0x218] sm:$0xf0]  ;;  %v1141_v25 = vld [vmem:[#allocation10 + $0xd8] sm:$0xf]  ;;  %v1366_v26 = vld [vmem:[#allocation10 + $0xe0] sm:$0xf0] }
  0x2e   :  { %v1298_v27 = vor.u32 %v1405_v24, %v1297_v22  ;;  %v1142_v28 = vor.u32 %v1366_v26, %v1141_v25  ;;  %v1377_v29 = vld [vmem:[#allocation10 + $0x13c] sm:$0xf]  ;;  %v1191_v30 = vld [vmem:[#allocation10 + $0x144] sm:$0xf0]  ;;  %v1356_v32 = vld [vmem:[#allocation10 + $0x94] sm:$0xf] }
  0x2f   :  { %819 = vmatpush.bf16.msra.mxu0 %v1106_v38  ;;  %832 = vmatpush.bf16.msra.mxu1 %v1202_v40  ;;  %v1194_v31 = vor.u32 %v1377_v29, %v1191_v30  ;;  %v1107_v33 = vld [vmem:[#allocation10 + $0x9c] sm:$0xf0]  ;;  %v1285_v35 = vld [vmem:[#allocation10 + $0x1f8] sm:$0xf]  ;;  %v1402_v36 = vld [vmem:[#allocation10 + $0x200] sm:$0xf0] }
  0x30   :  { %864 = vmatpush.bf16.msra.mxu3 %v1322_v19  ;;  %845 = vmatpush.bf16.msra.mxu2 %v1298_v27  ;;  %v1110_v34 = vor.u32 %v1356_v32, %v1107_v33  ;;  %v1286_v37 = vor.u32 %v1402_v36, %v1285_v35  ;;  %v1129_v38 = vld [vmem:[#allocation10 + $0xc0] sm:$0xf]  ;;  %v1363_v39 = vld [vmem:[#allocation10 + $0xc8] sm:$0xf0]  ;;  %v1374_v40 = vld [vmem:[#allocation10 + $0x124] sm:$0xf] }
  0x31   :  { %v1130_v41 = vor.u32 %v1363_v39, %v1129_v38  ;;  %v1179_v42 = vld [vmem:[#allocation10 + $0x12c] sm:$0xf0]  ;;  %v1407_v43 = vld [vmem:[#allocation10 + $0x22c] sm:$0xf]  ;;  %v1353_v47 = vld [vmem:[#allocation10 + $0x7c] sm:$0xf] }
  0x32   :  { %v1182_v45 = vor.u32 %v1374_v40, %v1179_v42  ;;  %v1095_v48 = vld [vmem:[#allocation10 + $0x84] sm:$0xf0]  ;;  %v1273_v49 = vld [vmem:[#allocation10 + $0x1e0] sm:$0xf]  ;;  %v1371_v52 = vld [vmem:[#allocation10 + $0x10c] sm:$0xf] }
  0x33   :  { %820 = vmatpush.bf16.msra.mxu0 %v1094_v44  ;;  %833 = vmatpush.bf16.msra.mxu1 %v1190_v46  ;;  %v1311_v44 = vld [vmem:[#allocation10 + $0x234] sm:$0xf0]  ;;  %v1098_v50 = vor.u32 %v1353_v47, %v1095_v48  ;;  %v1404_v56 = vld [vmem:[#allocation10 + $0x214] sm:$0xf]  ;;  %v1299_v57 = vld [vmem:[#allocation10 + $0x21c] sm:$0xf0] }
  0x34   :  { %1027 = vmatmul.msk.bf16.vlgmr.msrb.gmra.mxu0 %vm229_vm2, %v121_v54  ;;  %1028 = vmatmul.msk.bf16.vlgmr.msrb.gmra.mxu1 %vm229_vm2, %v121_v54  ;;  %v1314_v46 = vor.u32 %v1407_v43, %v1311_v44  ;;  %v1083_v60 = vld [vmem:[#allocation10 + $0x6c] sm:$0xf0]  ;;  %v1396_v63 = vld [vmem:[#allocation10 + $0x1d0] sm:$0xf0]  ;;  %v1155_v2 = vld [vmem:[#allocation10 + $0xfc] sm:$0xf0] }
  0x35   :  { %1029 = vmatmul.msk.bf16.vlgmr.msrb.gmra.mxu2 %vm229_vm2, %v121_v54  ;;  %1030 = vmatmul.msk.bf16.vlgmr.msrb.gmra.mxu3 %vm229_vm2, %v121_v54  ;;  %v1401_v4 = vld [vmem:[#allocation10 + $0x1fc] sm:$0xf]  ;;  %v1287_v5 = vld [vmem:[#allocation10 + $0x204] sm:$0xf0]  ;;  %v1071_v8 = vld [vmem:[#allocation10 + $0x54] sm:$0xf0] }
  0x36   :  { %870 = vmatpush.bf16.msrb.mxu3 %v1122_v23  ;;  %846 = vmatpush.bf16.msra.mxu2 %v1286_v37  ;;  %v1249_v10 = vld [vmem:[#allocation10 + $0x1b0] sm:$0xf]  ;;  %v1393_v11 = vld [vmem:[#allocation10 + $0x1b8] sm:$0xf0]  ;;  %v1398_v16 = vld [vmem:[#allocation10 + $0x1e4] sm:$0xf] }
  0x37   :  { %821 = vmatpush.bf16.msra.mxu0 %v1082_v51  ;;  %834 = vmatpush.bf16.msra.mxu1 %v1178_v53  ;;  %v1399_v51 = vld [vmem:[#allocation10 + $0x1e8] sm:$0xf0]  ;;  %v1167_v53 = vld [vmem:[#allocation10 + $0x114] sm:$0xf0]  ;;  %v1250_v12 = vor.u32 %v1393_v11, %v1249_v10  ;;  %v1365_v13 = vld [vmem:[#allocation10 + $0xdc] sm:$0xf] }
  0x38   :  { %v1274_v54 = vor.u32 %v1399_v51, %v1273_v49  ;;  %v1170_v55 = vor.u32 %v1371_v52, %v1167_v53  ;;  %v1275_v17 = vld [vmem:[#allocation10 + $0x1ec] sm:$0xf0]  ;;  %v1344_v19 = vld [vmem:[#allocation10 + $0x34] sm:$0xf]  ;;  %v1059_v20 = vld [vmem:[#allocation10 + $0x3c] sm:$0xf0] }
  0x39   :  { %v1062_v21 = vor.u32 %v1344_v19, %v1059_v20  ;;  %v1237_v22 = vld [vmem:[#allocation10 + $0x198] sm:$0xf]  ;;  %v1390_v23 = vld [vmem:[#allocation10 + $0x1a0] sm:$0xf0]  ;;  %v1131_v26 = vld [vmem:[#allocation10 + $0xcc] sm:$0xf0] }
  0x3a   :  { %871 = vmatpush.bf16.msrb.mxu3 %v1110_v34  ;;  %847 = vmatpush.bf16.msra.mxu2 %v1274_v54  ;;  %v1238_v24 = vor.u32 %v1390_v23, %v1237_v22  ;;  %v1362_v25 = vld [vmem:[#allocation10 + $0xc4] sm:$0xf]  ;;  %v1263_v29 = vld [vmem:[#allocation10 + $0x1d4] sm:$0xf0]  ;;  %v1047_v32 = vld [vmem:[#allocation10 + $0x24] sm:$0xf0] }
  0x3b   :  { %822 = vmatpush.bf16.msra.mxu0 %v1070_v58  ;;  %835 = vmatpush.bf16.msra.mxu1 %v1166_v59  ;;  %v1302_v58 = vor.u32 %v1404_v56, %v1299_v57  ;;  %v1350_v59 = vld [vmem:[#allocation10 + $0x64] sm:$0xf]  ;;  %v1134_v27 = vor.u32 %v1362_v25, %v1131_v26  ;;  %v1225_v33 = vld [vmem:[#allocation10 + $0x180] sm:$0xf]  ;;  %v1387_v34 = vld [vmem:[#allocation10 + $0x188] sm:$0xf0] }
  0x3c   :  { %v1086_v61 = vor.u32 %v1350_v59, %v1083_v60  ;;  %v1226_v36 = vor.u32 %v1387_v34, %v1225_v33  ;;  %v1392_v37 = vld [vmem:[#allocation10 + $0x1b4] sm:$0xf]  ;;  %v1251_v38 = vld [vmem:[#allocation10 + $0x1bc] sm:$0xf0]  ;;  %v1338_v40 = vld [vmem:[#allocation10 + $0x4] sm:$0xf] }
  0x3d   :  { %v1254_v39 = vor.u32 %v1392_v37, %v1251_v38  ;;  %v1410_v43 = vld [vmem:[#allocation10 + $0x244] sm:$0xf]  ;;  %v1323_v44 = vld [vmem:[#allocation10 + $0x24c] sm:$0xf0]  ;;  %v1389_v48 = vld [vmem:[#allocation10 + $0x19c] sm:$0xf] }
  0x3e   :  { %872 = vmatpush.bf16.msrb.mxu3 %v1098_v50  ;;  %v1239_v49 = vld [vmem:[#allocation10 + $0x1a4] sm:$0xf0]  ;;  %v1386_v51 = vld [vmem:[#allocation10 + $0x184] sm:$0xf]  ;;  %v1227_v52 = vld [vmem:[#allocation10 + $0x18c] sm:$0xf0] }
  0x3f   :  { %823 = vmatpush.bf16.msra.mxu0 %v1058_v62  ;;  %836 = vmatpush.bf16.msra.mxu1 %v1154_v14  ;;  %v1261_v62 = vld [vmem:[#allocation10 + $0x1c8] sm:$0xf]  ;;  %v1242_v50 = vor.u32 %v1389_v48, %v1239_v49  ;;  %v1230_v53 = vor.u32 %v1386_v51, %v1227_v52  ;;  %v1412_v10 = vld [vmem:[#allocation10 + $0x250] sm:$0xf0]  ;;  %v1305_v19 = vld [vmem:[#allocation10 + $0x218] sm:$0xf] }
  0x40   :  { %v1262_v0 = vor.u32 %v1396_v63, %v1261_v62  ;;  %v1143_v14 = vld [vmem:[#allocation10 + $0xe4] sm:$0xf0]  ;;  %v1406_v20 = vld [vmem:[#allocation10 + $0x220] sm:$0xf0]  ;;  %v1125_v25 = vld [vmem:[#allocation10 + $0xb0] sm:$0xf] }
  0x41   :  { %v1146_v15 = vor.u32 %v1365_v13, %v1143_v14  ;;  %v1403_v33 = vld [vmem:[#allocation10 + $0x208] sm:$0xf0]  ;;  %v1113_v38 = vld [vmem:[#allocation10 + $0x98] sm:$0xf]  ;;  %v1400_v48 = vld [vmem:[#allocation10 + $0x1f0] sm:$0xf0] }
  0x42   :  { %873 = vmatpush.bf16.msrb.mxu3 %v1086_v61  ;;  %848 = vmatpush.bf16.msra.mxu2 %v1262_v0  ;;  %v1101_v51 = vld [vmem:[#allocation10 + $0x80] sm:$0xf]  ;;  %vm989_vm3 = vcmask 359424   ;;  %vm997_vm4 = vcmask 7168  }
  0x43   :  { %824 = vmatpush.bf16.msra.mxu0 %v1046_v1  ;;  %837 = vmatpush.bf16.msra.mxu1 %v1142_v28  ;;  %v1368_v1 = vld [vmem:[#allocation10 + $0xf4] sm:$0xf]  ;;  %v1395_v28 = vld [vmem:[#allocation10 + $0x1cc] sm:$0xf] }
  0x44   :  { %v1158_v3 = vor.u32 %v1368_v1, %v1155_v2  ;;  %v1266_v30 = vor.u32 %v1395_v28, %v1263_v29  ;;  %v1306_v28 = vor.u32 %v1406_v20, %v1305_v19  ;;  %v1361_v29 = vld [vmem:[#allocation10 + $0xb8] sm:$0xf0]  ;;  %v1370_v19 = vld [vmem:[#allocation10 + $0x100] sm:$0xf0] }
  0x46   :  { %849 = vmatpush.bf16.msra.mxu2 %v1250_v12 }
  0x47   :  { %825 = vmatpush.bf16.msra.mxu0 %v1034_v6  ;;  %838 = vmatpush.bf16.msra.mxu1 %v1130_v41  ;;  %v1290_v6 = vor.u32 %v1401_v4, %v1287_v5  ;;  %v1035_v41 = vld [vmem:[#allocation10 + $0xc] sm:$0xf0] }
  0x48   :  { %v1038_v42 = vor.u32 %v1338_v40, %v1035_v41  ;;  %v1317_v5 = vld [vmem:[#allocation10 + $0x230] sm:$0xf] }
  0x4a   :  { %850 = vmatpush.bf16.msra.mxu2 %v1238_v24 }
  0x4b   :  { %883 = vmatpush.bf16.msrb.mxu0 %v1218_v7  ;;  %896 = vmatpush.bf16.msrb.mxu1 %v1314_v46  ;;  %v1347_v7 = vld [vmem:[#allocation10 + $0x4c] sm:$0xf] }
  0x4c   :  { %v1074_v9 = vor.u32 %v1347_v7, %v1071_v8  ;;  %v1329_v7 = vld [vmem:[#allocation10 + $0x248] sm:$0xf] }
  0x4d   :  { %v1330_v14 = vor.u32 %v1412_v10, %v1329_v7  ;;  %v1173_v7 = vld [vmem:[#allocation10 + $0x110] sm:$0xf]  ;;  %v1245_v10 = vld [vmem:[#allocation10 + $0x1a0] sm:$0xf] }
  0x4e   :  { %874 = vmatpush.bf16.msrb.mxu3 %v1074_v9  ;;  %851 = vmatpush.bf16.msra.mxu2 %v1226_v36  ;;  %v1126_v36 = vor.u32 %v1361_v29, %v1125_v25  ;;  %v1053_v25 = vld [vmem:[#allocation10 + $0x20] sm:$0xf] }
  0x4f   :  { %884 = vmatpush.bf16.msrb.mxu0 %v1206_v18  ;;  %897 = vmatpush.bf16.msrb.mxu1 %v1302_v58  ;;  %v1278_v18 = vor.u32 %v1398_v16, %v1275_v17  ;;  %v285_v58 = vld [vmem:[%s1704_s4] sm:$0xf] }
  0x50   :  { %v287_v61 = vperm.slane %v285_v58, 0  ;;  %v288_v62 = vperm.slane %v285_v58, 1  ;;  %v289_v11 = vperm.slane %v285_v58, 2  ;;  %v290_v12 = vperm.slane %v285_v58, 3 }
  0x52   :  { %875 = vmatpush.bf16.msrb.mxu3 %v1062_v21 }
  0x53   :  { %885 = vmatpush.bf16.msrb.mxu0 %v1194_v31  ;;  %898 = vmatpush.bf16.msrb.mxu1 %v1290_v6  ;;  %v1341_v31 = vld [vmem:[#allocation10 + $0x1c] sm:$0xf] }
  0x54   :  { %v1050_v35 = vor.u32 %v1341_v31, %v1047_v32  ;;  %v1409_v6 = vld [vmem:[#allocation10 + $0x238] sm:$0xf0]  ;;  %v1293_v32 = vld [vmem:[#allocation10 + $0x200] sm:$0xf] }
  0x55   :  { %v1318_v13 = vor.u32 %v1409_v6, %v1317_v5  ;;  %v1385_v31 = vld [vmem:[#allocation10 + $0x178] sm:$0xf0]  ;;  %v1294_v41 = vor.u32 %v1403_v33, %v1293_v32  ;;  %v1077_v5 = vld [vmem:[#allocation10 + $0x50] sm:$0xf]  ;;  %v1041_v32 = vld [vmem:[#allocation10 + $0x8] sm:$0xf] }
  0x56   :  { %876 = vmatpush.bf16.msrb.mxu3 %v1050_v35  ;;  %v1349_v6 = vld [vmem:[#allocation10 + $0x58] sm:$0xf0]  ;;  %v1340_v33 = vld [vmem:[#allocation10 + $0x10] sm:$0xf0] }
  0x57   :  { %886 = vmatpush.bf16.msrb.mxu0 %v1182_v45  ;;  %899 = vmatpush.bf16.msrb.mxu1 %v1278_v18  ;;  %v1326_v45 = vor.u32 %v1410_v43, %v1323_v44  ;;  %v1209_v43 = vld [vmem:[#allocation10 + $0x158] sm:$0xf]  ;;  %v1382_v44 = vld [vmem:[#allocation10 + $0x160] sm:$0xf0] }
  0x59   :  { %916 = vmatpush.bf16.msrb.mxu2 %v1326_v45 }
  0x5a   :  { %877 = vmatpush.bf16.msrb.mxu3 %v1038_v42  ;;  %v1358_v42 = vld [vmem:[#allocation10 + $0xa0] sm:$0xf0] }
  0x5b   :  { %887 = vmatpush.bf16.msrb.mxu0 %v1170_v55  ;;  %900 = vmatpush.bf16.msrb.mxu1 %v1266_v30  ;;  %v1221_v30 = vld [vmem:[#allocation10 + $0x170] sm:$0xf]  ;;  %v1114_v49 = vor.u32 %v1358_v42, %v1113_v38 }
  0x5c   :  { %v1222_v37 = vor.u32 %v1385_v31, %v1221_v30 }
  0x5f   :  { %888 = vmatpush.bf16.msrb.mxu0 %v1158_v3  ;;  %901 = vmatpush.bf16.msrb.mxu1 %v1254_v39 }
  0x63   :  { %889 = vmatpush.bf16.msrb.mxu0 %v1146_v15  ;;  %902 = vmatpush.bf16.msrb.mxu1 %v1242_v50  ;;  %v1210_v50 = vor.u32 %v1382_v44, %v1209_v43 }
  0x67   :  { %890 = vmatpush.bf16.msrb.mxu0 %v1134_v27  ;;  %903 = vmatpush.bf16.msrb.mxu1 %v1230_v53  ;;  %v1355_v53 = vld [vmem:[#allocation10 + $0x88] sm:$0xf0] }
  0x68   :  { %v1102_v58 = vor.u32 %v1355_v53, %v1101_v51 }
  0xa1   :  { %v166_v46 = vpop.f32.mrf.mxu0  ;;  %v179_v47 = vpop.f32.mrf.mxu1 }
  0xa8   :  { %v192_v54 = vpop.f32.mrf.mxu2  ;;  %v205_v55 = vpop.f32.mrf.mxu3 }
  0xa9   :  { %v168_v56 = vpop.f32.mrf.mxu0  ;;  %v181_v57 = vpop.f32.mrf.mxu1 }
  0xaa   :  { %v1269_v56 = vld [vmem:[#allocation10 + $0x1d0] sm:$0xf]  ;;  %v1397_v57 = vld [vmem:[#allocation10 + $0x1d8] sm:$0xf0] }
  0xb0   :  { %v194_v59 = vpop.f32.mrf.mxu2  ;;  %v207_v60 = vpop.f32.mrf.mxu3 }
  0xb1   :  { %v242_v63 = vpop.f32.mrf.mxu0  ;;  %v255_v0 = vpop.f32.mrf.mxu1  ;;  %v1089_v60 = vld [vmem:[#allocation10 + $0x68] sm:$0xf] }
  0xb2   :  { %v243_v1 = vadd.f32 %v242_v63, %v166_v46  ;;  %v256_v2 = vadd.f32 %v255_v0, %v179_v47  ;;  %v1281_v47 = vld [vmem:[#allocation10 + $0x1e8] sm:$0xf]  ;;  %v1376_v63 = vld [vmem:[#allocation10 + $0x130] sm:$0xf0]  ;;  %v1270_v0 = vor.u32 %v1397_v57, %v1269_v56 }
  0xb3   :  { %v1282_v52 = vor.u32 %v1400_v48, %v1281_v47 }
  0xb4   :  { %v295_v3 = vadd.f32 %v287_v61, %v243_v1  ;;  %v296_v4 = vadd.f32 %v288_v62, %v256_v2  ;;  %v1352_v61 = vld [vmem:[#allocation10 + $0x70] sm:$0xf0]  ;;  %v1185_v62 = vld [vmem:[#allocation10 + $0x128] sm:$0xf]  ;;  %v1257_v1 = vld [vmem:[#allocation10 + $0x1b8] sm:$0xf] }
  0xb5   :  { %v1394_v2 = vld [vmem:[#allocation10 + $0x1c0] sm:$0xf0] }
  0xb6   :  { %v299_v8 = vmax.f32 %v295_v3, 0.0  ;;  %v300_v9 = vmax.f32 %v296_v4, 0.0  ;;  %v1090_v3 = vor.u32 %v1352_v61, %v1089_v60  ;;  %v1186_v4 = vor.u32 %v1376_v63, %v1185_v62 }
  0xb8   :  { %v1668_v15 = vpack.c.bf16 %v299_v8, %v299_v8  ;;  %v1670_v16 = vpack.c.bf16 %v300_v9, %v300_v9  ;;  %v268_v17 = vpop.f32.mrf.mxu2  ;;  %v281_v18 = vpop.f32.mrf.mxu3  ;;  %v1373_v8 = vld [vmem:[#allocation10 + $0x118] sm:$0xf0]  ;;  %v1258_v9 = vor.u32 %v1394_v2, %v1257_v1 }
  0xb9   :  { %v269_v21 = vadd.f32 %v268_v17, %v192_v54  ;;  %v282_v22 = vadd.f32 %v281_v18, %v205_v55  ;;  %v244_v23 = vpop.f32.mrf.mxu0  ;;  %v257_v24 = vpop.f32.mrf.mxu1  ;;  %v1197_v54 = vld [vmem:[#allocation10 + $0x140] sm:$0xf]  ;;  %v1379_v55 = vld [vmem:[#allocation10 + $0x148] sm:$0xf0]  ;;  %v1346_v17 = vld [vmem:[#allocation10 + $0x40] sm:$0xf0] }
  0xba   :  { %826 = vmatmul.bf16.vlgmr.msra.gmra.mxu0 %v1668_v15  ;;  %839 = vmatmul.bf16.vlgmr.msra.gmra.mxu1 %v1670_v16  ;;  %v1198_v59 = vor.u32 %v1379_v55, %v1197_v54  ;;  %v1161_v18 = vld [vmem:[#allocation10 + $0xf8] sm:$0xf] }
  0xbb   :  { %v297_v26 = vadd.f32 %v289_v11, %v269_v21  ;;  %v298_v27 = vadd.f32 %v290_v12, %v282_v22  ;;  %948 = vmatpush.bf16.msra.mxu0 %v1318_v13  ;;  %968 = vmatpush.bf16.msra.mxu1 %v1330_v14  ;;  %v1391_v11 = vld [vmem:[#allocation10 + $0x1a8] sm:$0xf0]  ;;  %v1078_v12 = vor.u32 %v1349_v6, %v1077_v5  ;;  %v1065_v14 = vld [vmem:[#allocation10 + $0x38] sm:$0xf]  ;;  %v1233_v21 = vld [vmem:[#allocation10 + $0x188] sm:$0xf] }
  0xbc   :  { %v1174_v13 = vor.u32 %v1373_v8, %v1173_v7  ;;  %v1246_v20 = vor.u32 %v1391_v11, %v1245_v10  ;;  %v1388_v22 = vld [vmem:[#allocation10 + $0x190] sm:$0xf0]  ;;  %v1066_v23 = vor.u32 %v1346_v17, %v1065_v14  ;;  %v1162_v24 = vor.u32 %v1370_v19, %v1161_v18  ;;  %v977_v7 = vld [vmem:[#allocation11] sm:$0x7] }
  0xbd   :  { %v301_v34 = vmax.f32 %v297_v26, 0.0  ;;  %v302_v35 = vmax.f32 %v298_v27, 0.0  ;;  %v1343_v26 = vld [vmem:[#allocation10 + $0x28] sm:$0xf0]  ;;  %v1149_v27 = vld [vmem:[#allocation10 + $0xe0] sm:$0xf]  ;;  %v1234_v29 = vor.u32 %v1388_v22, %v1233_v21 }
  0xbe   :  { %v1054_v30 = vor.u32 %v1343_v26, %v1053_v25  ;;  %v980_v10 = vperm.slane %v977_v7, 1  ;;  %v981_v17 = vperm.slane %v977_v7, 2 }
  0xbf   :  { %v1674_v39 = vpack.c.bf16 %v301_v34, %v301_v34  ;;  %v1676_v40 = vpack.c.bf16 %v302_v35, %v302_v35  ;;  %949 = vmatpush.bf16.msra.mxu0 %v1306_v28  ;;  %v1367_v28 = vld [vmem:[#allocation10 + $0xe8] sm:$0xf0]  ;;  %v1137_v34 = vld [vmem:[#allocation10 + $0xc8] sm:$0xf]  ;;  %v1364_v35 = vld [vmem:[#allocation10 + $0xd0] sm:$0xf0] }
  0xc0   :  { %v270_v45 = vpop.f32.mrf.mxu2  ;;  %v283_v46 = vpop.f32.mrf.mxu3  ;;  %v1150_v31 = vor.u32 %v1367_v28, %v1149_v27  ;;  %v995_v27 = vstv %s1708_s8 }
  0xc1   :  { %852 = vmatmul.bf16.vlgmr.msra.gmra.mxu2 %v1674_v39  ;;  %1331 = vmatmul.msk.bf16.vlgmr.msra.gmra.mxu3 %vm229_vm2, %v1676_v40 }
  0xc2   :  { %922 = vmatpush.bf16.msra.mxu2 %v1126_v36  ;;  %935 = vmatpush.bf16.msra.mxu3 %v1222_v37  ;;  %v1042_v36 = vor.u32 %v1340_v33, %v1041_v32  ;;  %v1138_v37 = vor.u32 %v1364_v35, %v1137_v34 }
  0xc3   :  { %950 = vmatpush.bf16.msra.mxu0 %v1294_v41 }
  0xc6   :  { %923 = vmatpush.bf16.msra.mxu2 %v1114_v49  ;;  %936 = vmatpush.bf16.msra.mxu3 %v1210_v50 }
  0xc7   :  { %951 = vmatpush.bf16.msra.mxu0 %v1282_v52 }
  0xca   :  { %924 = vmatpush.bf16.msra.mxu2 %v1102_v58  ;;  %937 = vmatpush.bf16.msra.mxu3 %v1198_v59 }
  0xcb   :  { %891 = vmatmul.bf16.vlgmr.msrb.gmra.mxu0 %v1670_v16  ;;  %904 = vmatmul.bf16.vlgmr.msrb.gmra.mxu1 %v1674_v39 }
  0xcc   :  { %952 = vmatpush.bf16.msra.mxu0 %v1270_v0 }
  0xce   :  { %925 = vmatpush.bf16.msra.mxu2 %v1090_v3  ;;  %938 = vmatpush.bf16.msra.mxu3 %v1186_v4 }
  0xd0   :  { %953 = vmatpush.bf16.msra.mxu0 %v1258_v9 }
  0xd1   :  { %878 = vmatmul.bf16.vlgmr.msrb.gmra.mxu3 %v1668_v15  ;;  %1332 = vmatmul.msk.bf16.vlgmr.msrb.gmra.mxu2 %vm229_vm2, %v1676_v40 }
  0xd2   :  { %926 = vmatpush.bf16.msra.mxu2 %v1078_v12  ;;  %939 = vmatpush.bf16.msra.mxu3 %v1174_v13  ;;  %v979_v13 = vperm.slane %v977_v7, 0 }
  0xd4   :  { %954 = vmatpush.bf16.msra.mxu0 %v1246_v20 }
  0xd6   :  { %927 = vmatpush.bf16.msra.mxu2 %v1066_v23  ;;  %940 = vmatpush.bf16.msra.mxu3 %v1162_v24 }
  0xd8   :  { %955 = vmatpush.bf16.msra.mxu0 %v1234_v29 }
  0xda   :  { %928 = vmatpush.bf16.msra.mxu2 %v1054_v30  ;;  %941 = vmatpush.bf16.msra.mxu3 %v1150_v31 }
  0xdb   :  { %956 = vmatmul.bf16.vlgmr.msra.gmra.mxu0 %v1674_v39  ;;  %1333 = vmatmul.msk.bf16.vlgmr.msra.gmra.mxu1 %vm229_vm2, %v1676_v40  ;;  %v407_v40 = vld [vmem:[%s1706_s6] sm:$0x7] }
  0xdc   :  { %v410_v51 = vperm.slane %v407_v40, 1  ;;  %v411_v0 = vperm.slane %v407_v40, 2 }
  0xde   :  { %929 = vmatpush.bf16.msra.mxu2 %v1042_v36  ;;  %942 = vmatpush.bf16.msra.mxu3 %v1138_v37 }
  0xe1   :  { %930 = vmatmul.bf16.vlgmr.msra.gmra.mxu2 %v1668_v15  ;;  %943 = vmatmul.bf16.vlgmr.msra.gmra.mxu3 %v1670_v16  ;;  %v409_v16 = vperm.slane %v407_v40, 0 }
 0x137   :  { %v827_v38 = vpop.f32.mrf.mxu0  ;;  %v840_v41 = vpop.f32.mrf.mxu1 }
 0x138   :  { %v828_v56 = vadd.f32 %v827_v38, %v409_v16 }
 0x13a   :  { %v841_v60 = vadd.f32 %v840_v41, %v828_v56 }
 0x13f   :  { %v829_v42 = vpop.f32.mrf.mxu0  ;;  %v842_v43 = vpop.f32.mrf.mxu1 }
 0x144   :  { %v853_v44 = vpop.f32.mrf.mxu2  ;;  %v866_v45 = vpop.f32.mrf.mxu3 }
 0x145   :  { %v854_v1 = vadd.f32 %v853_v44, %v841_v60 }
 0x147   :  { %v867_v6 = vadd.f32 %v866_v45, %v854_v1 }
 0x148   :  { %v892_v46 = vpop.f32.mrf.mxu0  ;;  %v905_v47 = vpop.f32.mrf.mxu1 }
 0x149   :  { %v974_v12 = vmax.f32 %v867_v6, 0.0 }
 0x14b   :  { %v985_v22 = vmul.f32 %v979_v13, %v974_v12 }
 0x14c   :  { %v855_v48 = vpop.f32.mrf.mxu2  ;;  %v868_v49 = vpop.f32.mrf.mxu3 }
 0x150   :  { %v894_v39 = vpop.f32.mrf.mxu0  ;;  %v907_v50 = vpop.f32.mrf.mxu1 }
 0x154   :  { %v879_v15 = vpop.f32.mrf.mxu3  ;;  %v918_v52 = vpop.f32.mrf.mxu2 }
 0x155   :  { %v880_v53 = vadd.f32 %v879_v15, %v410_v51 }
 0x157   :  { %v893_v57 = vadd.f32 %v892_v46, %v880_v53 }
 0x158   :  { %v957_v54 = vpop.f32.mrf.mxu0  ;;  %v970_v55 = vpop.f32.mrf.mxu1 }
 0x159   :  { %v906_v61 = vadd.f32 %v905_v47, %v893_v57 }
 0x15b   :  { %v919_v2 = vadd.f32 %v918_v52, %v906_v61 }
 0x15c   :  { %v881_v58 = vpop.f32.mrf.mxu3  ;;  %v920_v59 = vpop.f32.mrf.mxu2 }
 0x15d   :  { %v975_v9 = vmax.f32 %v919_v2, 0.0 }
 0x15f   :  { %v986_v18 = vmul.f32 %v980_v10, %v975_v9 }
 0x160   :  { %v959_v62 = vpop.f32.mrf.mxu0  ;;  %v972_v63 = vpop.f32.mrf.mxu1 }
 0x161   :  { %v988_v24 = vadd.f32 %v986_v18, %v985_v22 }
 0x164   :  { %v931_v3 = vpop.f32.mrf.mxu2  ;;  %v944_v4 = vpop.f32.mrf.mxu3 }
 0x165   :  { %v932_v5 = vadd.f32 %v931_v3, %v411_v0 }
 0x167   :  { %v945_v8 = vadd.f32 %v944_v4, %v932_v5 }
 0x169   :  { %v958_v11 = vadd.f32 %v957_v54, %v945_v8 }
 0x16b   :  { %v971_v14 = vadd.f32 %v970_v55, %v958_v11 }
 0x16c   :  { %v933_v19 = vpop.f32.mrf.mxu2  ;;  %v946_v20 = vpop.f32.mrf.mxu3 }
 0x16d   :  { %v976_v21 = vmax.f32 %v971_v14, 0.0 }
 0x16f   :  { %v987_v23 = vmul.f32 %v981_v17, %v976_v21 }
 0x171   :  { %v990_v25 = vsel %vm989_vm3, %v987_v23, 0.0 }
 0x172   :  { %v991_v26 = vadd.f32 %v990_v25, %v988_v24 }
 0x174   :  { %992 = vadd.xlane.f32.xlu0 %v991_v26 }
 0x1e7   :  { %v993_v28 = vpop.xlane.xlu0 %992 }
 0x1e8   :  { %v996_v29 = vadd.f32 %v995_v27, %v993_v28 }
 0x1ea   :  { %998 = vst.msk [vmem:[%s1709_s9] sm:$0xff] %vm997_vm4, %v996_v29 }
 0x1eb   :  { %1003 = vsyncpa [#allocation4], 1 }
 0x1ec   :  { %1004 = vsyncpa [#allocation6], 1 }
 0x1ed   :  { %1005 = vsyncpa [#allocation9], 1 }
 0x1ee   :  { %1006 = vsyncpa [#allocation12], 1 }

</bundles_post_ra>
